<compile_context>
chip_gen: v6e
topology: v6e:2x2x1
jax: 0.10.0
libtpu: 0.0.40
codegen_flags: <defaults>
</compile_context>

<pallas_src>
import jax
import jax.numpy as jnp
from jax import lax
from jax.experimental import pallas as pl
from jax.experimental.pallas import tpu as pltpu

IN_CHANNELS = 17
FEATURE_DIM = 64          # H: true hidden / feature width
NUM_LAYERS = 2
HP = 128                  # lane-padded gate / hidden width (one full vreg)
MAX_CHUNK = 128           # timesteps per grid step (multiple of 8)


def _make_chunk_kernel(chunk, total_steps, needs_mask):
    """Build a kernel that runs `chunk` recurrent timesteps per grid step."""

    def kernel(xs_ref, h0_ref, ew1_ref, eb1_ref,
               wx0_ref, bx0_ref, wh0_ref, bh0_ref,
               wx1_ref, bx1_ref, wh1_ref, bh1_ref,
               ys_ref, hout_ref, gi0_ref):
        c = pl.program_id(0)

        @pl.when(c == 0)
        def _init():
            # NOTE: pad lanes [H:HP) of h0_ref MUST be zero (wrapper ensures
            # this) for the pad-lanes-stay-zero argument below to hold.
            hout_ref[...] = h0_ref[...]                    # (NUM_LAYERS, HP)

        # ---- chunk prologue: batched, non-recurrent work (M = chunk) ----
        # Embedding Linear(17->64) + ReLU (lane-padded; pad lanes stay 0).
        # The second embedding Linear (no nonlinearity after it) is folded
        # into wx0 offline, so the whole layer-0 input transform gi0 is
        # precomputed here for every timestep of the chunk.
        e = jnp.maximum(
            jnp.dot(xs_ref[...], ew1_ref[...],
                    preferred_element_type=jnp.float32) + eb1_ref[...],
            0.0)                                           # (chunk, HP)
        gi0_ref[...] = jnp.dot(e.astype(jnp.bfloat16), wx0_ref[...],
                               preferred_element_type=jnp.float32) + bx0_ref[...]

        wh0 = wh0_ref[...]
        bh0 = bh0_ref[...]
        wx1 = wx1_ref[...]
        bx1 = bx1_ref[...]
        wh1 = wh1_ref[...]
        bh1 = bh1_ref[...]

        def gru_update(gi, gh, h):
            # gi/gh lane blocks (each a full 128-lane vreg): r | z | n.
            r = jax.nn.sigmoid(gi[:, 0:HP] + gh[:, 0:HP])
            z = jax.nn.sigmoid(gi[:, HP:2 * HP] + gh[:, HP:2 * HP])
            n = jnp.tanh(gi[:, 2 * HP:3 * HP] + r * gh[:, 2 * HP:3 * HP])
            return (1.0 - z) * n + z * h                   # pad lanes stay 0

        def step(i, carry):
            h0, h1 = carry
            # Layer 0: input contribution precomputed -> only the hidden
            # matmul sits on the serial recurrence.
            gh0 = jnp.dot(h0.astype(jnp.bfloat16), wh0,
                          preferred_element_type=jnp.float32) + bh0
            h0n = gru_update(gi0_ref[pl.ds(i, 1), :], gh0, h0)
            # Layer 1: split x-side / h-side matmuls (no per-step concatenate).
            # TODO(synk): nn.GRU dropout(p=0.2) between layers applies only in
            # training mode; eval-mode (identity) semantics implemented here.
            gi1 = jnp.dot(h0n.astype(jnp.bfloat16), wx1,
                          preferred_element_type=jnp.float32) + bx1
            gh1 = jnp.dot(h1.astype(jnp.bfloat16), wh1,
                          preferred_element_type=jnp.float32) + bh1
            h1n = gru_update(gi1, gh1, h1)
            if needs_mask:  # freeze hidden state on zero-padded tail steps
                valid = (c * chunk + i) < total_steps
                h0n = jnp.where(valid, h0n, h0)
                h1n = jnp.where(valid, h1n, h1)
            ys_ref[pl.ds(i, 1), :] = h1n                   # GRU output = top h
            return (h0n, h1n)

        h0 = hout_ref[0:1, :]
        h1 = hout_ref[1:2, :]
        unroll = 2 if chunk % 2 == 0 else 1
        h0, h1 = lax.fori_loop(0, chunk, step, (h0, h1), unroll=unroll)
        hout_ref[0:1, :] = h0                              # once per chunk
        hout_ref[1:2, :] = h1

    return kernel


def make_params(key):
    """Deterministic parameter init mimicking PyTorch's uniform(-1/sqrt(fan), +).

    Weights are stored TRANSPOSED vs torch ((in, out)), gate order (r, z, n).
    """
    H, C = FEATURE_DIM, IN_CHANNELS
    ks = jax.random.split(key, 16)

    def u(k, shape, fan_in):
        bound = 1.0 / jnp.sqrt(fan_in)
        return jax.random.uniform(k, shape, jnp.float32, -bound, bound)

    return dict(
        ew1=u(ks[0], (C, H), C), eb1=u(ks[1], (1, H), C),
        ew2=u(ks[2], (H, H), H), eb2=u(ks[3], (1, H), H),
        # GRU layer 0
        wih0=u(ks[4], (H, 3 * H), H), whh0=u(ks[5], (H, 3 * H), H),
        bih0=u(ks[6], (1, 3 * H), H), bhh0=u(ks[7], (1, 3 * H), H),
        # GRU layer 1
        wih1=u(ks[8], (H, 3 * H), H), whh1=u(ks[9], (H, 3 * H), H),
        bih1=u(ks[10], (1, 3 * H), H), bhh1=u(ks[11], (1, 3 * H), H),
    )


def pack_params(params):
    """Fold emb-Linear2 into GRU layer 0, split x/h weights per layer,
    lane-pad each gate block to 128 lanes, cast GRU weights to bf16."""
    H, C = FEATURE_DIM, IN_CHANNELS

    ew1_p = jnp.zeros((C, HP), jnp.float32).at[:, :H].set(params["ew1"])
    eb1_p = jnp.zeros((1, HP), jnp.float32).at[:, :H].set(params["eb1"])

    # No nonlinearity between emb Linear2 and the GRU input matmul -> fold
    # offline (in f32, before the bf16 cast).
    wih0f = params["ew2"] @ params["wih0"]                        # (H, 3H)
    bih0f = params["eb2"] @ params["wih0"] + params["bih0"]       # (1, 3H)

    def lay(w, b):
        """(H,3H)/(1,3H) -> lane-padded (HP,3*HP) bf16 / (1,3*HP) f32.

        Gate g (r=0, z=1, n=2) occupies lanes [g*HP, g*HP + H); pad rows/cols
        are zero so pad lanes of activations provably stay zero.
        """
        wp = jnp.zeros((HP, 3 * HP), jnp.float32)
        bp = jnp.zeros((1, 3 * HP), jnp.float32)
        for g in range(3):
            wp = wp.at[:H, g * HP:g * HP + H].set(w[:, g * H:(g + 1) * H])
            bp = bp.at[:, g * HP:g * HP + H].set(b[:, g * H:(g + 1) * H])
        return wp.astype(jnp.bfloat16), bp

    wx0, bx0 = lay(wih0f, bih0f)
    wh0, bh0 = lay(params["whh0"], params["bhh0"])
    wx1, bx1 = lay(params["wih1"], params["bih1"])
    wh1, bh1 = lay(params["whh1"], params["bhh1"])

    return dict(ew1=ew1_p, eb1=eb1_p,
                wx0=wx0, bx0=bx0, wh0=wh0, bh0=bh0,
                wx1=wx1, bx1=bx1, wh1=wh1, bh1=bh1)


@jax.jit
def encoder_rnn_sequence(xs, hidden, packed):
    """Run T recurrent applications of EncoderRNN.forward in ONE pallas_call.

    xs: (T, in_channels); hidden: (num_layers, 1, feature_dim).
    Returns: outputs (T, 1, feature_dim), new hidden (num_layers, 1, feature_dim).
    """
    T = xs.shape[0]
    H = FEATURE_DIM
    chunk = T if T <= MAX_CHUNK else MAX_CHUNK
    num_chunks = -(-T // chunk)
    T_pad = num_chunks * chunk
    needs_mask = (T_pad != T)

    xs2 = xs.reshape(T, IN_CHANNELS).astype(jnp.float32)
    if needs_mask:
        xs2 = jnp.pad(xs2, ((0, T_pad - T), (0, 0)))

    # Pad lanes [H:HP) must be zero (the kernel relies on it).
    h0p = jnp.zeros((NUM_LAYERS, HP), jnp.float32).at[:, :H].set(
        hidden.reshape(NUM_LAYERS, H))

    kernel = _make_chunk_kernel(chunk, T, needs_mask)

    const = lambda c: (0, 0)
    in_specs = [
        pl.BlockSpec((chunk, IN_CHANNELS), lambda c: (c, 0)),    # x chunk
        pl.BlockSpec((NUM_LAYERS, HP), const),                   # initial hidden
        pl.BlockSpec((IN_CHANNELS, HP), const),                  # ew1 (resident)
        pl.BlockSpec((1, HP), const),                            # eb1
        pl.BlockSpec((HP, 3 * HP), const),                       # wx0 (bf16)
        pl.BlockSpec((1, 3 * HP), const),                        # bx0
        pl.BlockSpec((HP, 3 * HP), const),                       # wh0 (bf16)
        pl.BlockSpec((1, 3 * HP), const),                        # bh0
        pl.BlockSpec((HP, 3 * HP), const),                       # wx1 (bf16)
        pl.BlockSpec((1, 3 * HP), const),                        # bx1
        pl.BlockSpec((HP, 3 * HP), const),                       # wh1 (bf16)
        pl.BlockSpec((1, 3 * HP), const),                        # bh1
    ]
    out_specs = (
        pl.BlockSpec((chunk, HP), lambda c: (c, 0)),             # ys (lane-dense)
        pl.BlockSpec((NUM_LAYERS, HP), const),                   # hidden carry
    )

    flops_step = 2 * IN_CHANNELS * HP + 4 * 2 * HP * 3 * HP
    weight_bytes = (2 * 4 * HP * 3 * HP                          # bf16 GRU weights
                    + 4 * (IN_CHANNELS * HP + HP + 4 * 3 * HP))  # f32 ew1 + biases
    cost = pl.CostEstimate(
        flops=int(T_pad * flops_step),
        transcendentals=int(T_pad * NUM_LAYERS * 3 * HP),
        bytes_accessed=int(weight_bytes
                           + T_pad * 4 * (IN_CHANNELS + HP)      # xs in + ys out
                           + 2 * 4 * NUM_LAYERS * HP),           # hidden in/out
    )

    ys, hout = pl.pallas_call(
        kernel,
        out_shape=(jax.ShapeDtypeStruct((T_pad, HP), jnp.float32),
                   jax.ShapeDtypeStruct((NUM_LAYERS, HP), jnp.float32)),
        grid=(num_chunks,),
        in_specs=in_specs,
        out_specs=out_specs,
        scratch_shapes=[pltpu.VMEM((chunk, 3 * HP), jnp.float32)],  # gi0 per chunk
        compiler_params=pltpu.CompilerParams(
            # Time axis carries hidden state -> sequential. (A batched variant
            # would add a leading "parallel" axis to engage v7x's 2nd TC.)
            dimension_semantics=("arbitrary",),
            vmem_limit_bytes=32 * 1024 * 1024),
        cost_estimate=cost,
    )(xs2, h0p, packed["ew1"], packed["eb1"],
      packed["wx0"], packed["bx0"], packed["wh0"], packed["bh0"],
      packed["wx1"], packed["bx1"], packed["wh1"], packed["bh1"])

    outputs = ys[:T, :H].reshape(T, 1, H)                  # drop pad rows/lanes
    new_hidden = hout[:, :H].reshape(NUM_LAYERS, 1, H)
    return outputs, new_hidden


def encoder_rnn_forward(x, hidden, packed):
    """Exact EncoderRNN.forward: single sample, single timestep (T = 1)."""
    outputs, new_hidden = encoder_rnn_sequence(
        x.reshape(1, IN_CHANNELS), hidden, packed)
    return outputs.reshape(1, 1, FEATURE_DIM), new_hidden


def init_hidden():
    return jnp.zeros((NUM_LAYERS, 1, FEATURE_DIM), jnp.float32)


def encoder_rnn_reference(xs, hidden, params):
    """Pure-JAX f32 reference (unfused torch math) for validation."""
    H = FEATURE_DIM

    def cell(xt, h, wih, whh, bih, bhh):
        gi = xt @ wih + bih
        gh = h @ whh + bhh
        r = jax.nn.sigmoid(gi[:, 0:H] + gh[:, 0:H])
        z = jax.nn.sigmoid(gi[:, H:2 * H] + gh[:, H:2 * H])
        n = jnp.tanh(gi[:, 2 * H:] + r * gh[:, 2 * H:])
        return (1.0 - z) * n + z * h

    h0, h1 = hidden[0], hidden[1]
    outs = []
    for t in range(xs.shape[0]):
        e = jnp.maximum(xs[t:t + 1] @ params["ew1"] + params["eb1"], 0.0)
        e = e @ params["ew2"] + params["eb2"]
        h0 = cell(e, h0, params["wih0"], params["whh0"], params["bih0"], params["bhh0"])
        h1 = cell(h0, h1, params["wih1"], params["whh1"], params["bih1"], params["bhh1"])
        outs.append(h1)
    return jnp.stack(outs, 0), jnp.stack([h0, h1], 0)


if __name__ == "__main__":
    key = jax.random.PRNGKey(0)
    k_param, k_x, k_seq, k_long = jax.random.split(key, 4)

    params = make_params(k_param)
    packed = pack_params(params)

    # --- exact module forward: one (1, 17) sample, one timestep ---
    x = jax.random.normal(k_x, (1, IN_CHANNELS), jnp.float32)
    hidden = init_hidden()
    output, new_hidden = encoder_rnn_forward(x, hidden, packed)
    jax.block_until_ready((output, new_hidden))
    assert output.shape == (1, 1, FEATURE_DIM)
    assert new_hidden.shape == (NUM_LAYERS, 1, FEATURE_DIM)
    assert bool(jnp.allclose(output[0, 0], new_hidden[-1, 0]))

    # single-step kernel matches the f32 unfused reference (bf16 GRU weights)
    o1_r, h1_r = encoder_rnn_reference(x, hidden, params)
    assert bool(jnp.allclose(output[0], o1_r[0], atol=2e-2, rtol=2e-2))
    assert bool(jnp.allclose(new_hidden, h1_r, atol=2e-2, rtol=2e-2))

    # --- amortized rollout: T recurrent steps in one pallas_call (1 chunk) ---
    T = 8
    xs = jax.random.normal(k_seq, (T, IN_CHANNELS), jnp.float32)
    outs_k, h_k = encoder_rnn_sequence(xs, init_hidden(), packed)
    jax.block_until_ready((outs_k, h_k))
    outs_r, h_r = encoder_rnn_reference(xs, init_hidden(), params)
    assert bool(jnp.allclose(outs_k, outs_r, atol=2e-2, rtol=2e-2))
    assert bool(jnp.allclose(h_k, h_r, atol=2e-2, rtol=2e-2))

    # --- multi-chunk rollout with padded tail (exercises the mask path) ---
    T2 = 160  # 2 chunks of 128, 96 padded steps masked out
    xs2 = jax.random.normal(k_long, (T2, IN_CHANNELS), jnp.float32)
    outs2_k, h2_k = encoder_rnn_sequence(xs2, init_hidden(), packed)
    jax.block_until_ready((outs2_k, h2_k))
    outs2_r, h2_r = encoder_rnn_reference(xs2, init_hidden(), params)
    assert bool(jnp.allclose(outs2_k, outs2_r, atol=3e-2, rtol=3e-2))
    assert bool(jnp.allclose(h2_k, h2_r, atol=3e-2, rtol=3e-2))

    print("KERNEL_OK")
</pallas_src>

<mosaic_0001>
module attributes {stable_mosaic.version = 11 : i64} {
  func.func @kernel(%arg0: i32, %arg1: memref<1x17xf32, #tpu.memory_space<vmem>>, %arg2: memref<2x128xf32, #tpu.memory_space<vmem>>, %arg3: memref<17x128xf32, #tpu.memory_space<vmem>>, %arg4: memref<1x128xf32, #tpu.memory_space<vmem>>, %arg5: memref<128x384xbf16, #tpu.memory_space<vmem>>, %arg6: memref<1x384xf32, #tpu.memory_space<vmem>>, %arg7: memref<128x384xbf16, #tpu.memory_space<vmem>>, %arg8: memref<1x384xf32, #tpu.memory_space<vmem>>, %arg9: memref<128x384xbf16, #tpu.memory_space<vmem>>, %arg10: memref<1x384xf32, #tpu.memory_space<vmem>>, %arg11: memref<128x384xbf16, #tpu.memory_space<vmem>>, %arg12: memref<1x384xf32, #tpu.memory_space<vmem>>, %arg13: memref<1x128xf32, #tpu.memory_space<vmem>>, %arg14: memref<2x128xf32, #tpu.memory_space<vmem>>, %arg15: memref<1x384xf32, #tpu.memory_space<vmem>>) attributes {dimension_semantics = [#tpu.dimension_semantics<arbitrary>], iteration_bounds = array<i64: 1>, scalar_prefetch = 0 : i64, scratch_operands = 1 : i64, tpu.core_type = #tpu.core_type<tc>, window_params = [{transform_indices = @transform_0, window_bounds = array<i64: 1, 17>}, {pipeline_mode = #tpu.pipeline_mode<synchronous>, transform_indices = @transform_1, window_bounds = array<i64: 2, 128>}, {pipeline_mode = #tpu.pipeline_mode<synchronous>, transform_indices = @transform_2, window_bounds = array<i64: 17, 128>}, {pipeline_mode = #tpu.pipeline_mode<synchronous>, transform_indices = @transform_3, window_bounds = array<i64: 1, 128>}, {pipeline_mode = #tpu.pipeline_mode<synchronous>, transform_indices = @transform_4, window_bounds = array<i64: 128, 384>}, {pipeline_mode = #tpu.pipeline_mode<synchronous>, transform_indices = @transform_5, window_bounds = array<i64: 1, 384>}, {pipeline_mode = #tpu.pipeline_mode<synchronous>, transform_indices = @transform_6, window_bounds = array<i64: 128, 384>}, {pipeline_mode = #tpu.pipeline_mode<synchronous>, transform_indices = @transform_7, window_bounds = array<i64: 1, 384>}, {pipeline_mode = #tpu.pipeline_mode<synchronous>, transform_indices = @transform_8, window_bounds = array<i64: 128, 384>}, {pipeline_mode = #tpu.pipeline_mode<synchronous>, transform_indices = @transform_9, window_bounds = array<i64: 1, 384>}, {pipeline_mode = #tpu.pipeline_mode<synchronous>, transform_indices = @transform_10, window_bounds = array<i64: 128, 384>}, {pipeline_mode = #tpu.pipeline_mode<synchronous>, transform_indices = @transform_11, window_bounds = array<i64: 1, 384>}, {transform_indices = @transform_12, window_bounds = array<i64: 1, 128>}, {pipeline_mode = #tpu.pipeline_mode<synchronous>, transform_indices = @transform_13, window_bounds = array<i64: 2, 128>}]} {
    %c0_i32 = arith.constant 0 : i32
    %0 = arith.cmpi eq, %arg0, %c0_i32 : i32
    %1 = arith.extui %0 : i1 to i32
    %c0_i32_0 = arith.constant 0 : i32
    %2 = arith.cmpi ne, %1, %c0_i32_0 : i32
    scf.if %2 {
      %c0_45 = arith.constant 0 : index
      %c0_46 = arith.constant 0 : index
      %91 = vector.load %arg2[%c0_45, %c0_46] : memref<2x128xf32, #tpu.memory_space<vmem>>, vector<2x128xf32>
      %c0_47 = arith.constant 0 : index
      %c0_48 = arith.constant 0 : index
      %92 = vector.load %arg14[%c0_47, %c0_48] : memref<2x128xf32, #tpu.memory_space<vmem>>, vector<2x128xf32>
      tpu.vector_store %arg14[%c0_47, %c0_48], %91 {strides = array<i32>} : memref<2x128xf32, #tpu.memory_space<vmem>>, vector<2x128xf32>,
    } else {
    }
    %c0 = arith.constant 0 : index
    %c0_1 = arith.constant 0 : index
    %3 = vector.load %arg1[%c0, %c0_1] : memref<1x17xf32, #tpu.memory_space<vmem>>, vector<1x17xf32>
    %c0_2 = arith.constant 0 : index
    %c0_3 = arith.constant 0 : index
    %4 = vector.load %arg3[%c0_2, %c0_3] : memref<17x128xf32, #tpu.memory_space<vmem>>, vector<17x128xf32>
    %cst = arith.constant dense<0.000000e+00> : vector<1x128xf32>
    %5 = tpu.matmul %3, %4, %cst {dimension_numbers = #tpu.dot_dimension_numbers<[1], [0], [0], [1], [0, 0, 1, 1], [], []>} : vector<1x17xf32>, vector<17x128xf32>, vector<1x128xf32> -> vector<1x128xf32>
    %c0_4 = arith.constant 0 : index
    %c0_5 = arith.constant 0 : index
    %6 = vector.load %arg4[%c0_4, %c0_5] : memref<1x128xf32, #tpu.memory_space<vmem>>, vector<1x128xf32>
    %7 = arith.addf %5, %6 : vector<1x128xf32>
    %cst_6 = arith.constant 0.000000e+00 : f32
    %8 = vector.broadcast %cst_6 : f32 to vector<1x128xf32>
    %9 = arith.maximumf %7, %8 : vector<1x128xf32>
    %10 = arith.truncf %9 : vector<1x128xf32> to vector<1x128xbf16>
    %c0_7 = arith.constant 0 : index
    %c0_8 = arith.constant 0 : index
    %11 = vector.load %arg5[%c0_7, %c0_8] : memref<128x384xbf16, #tpu.memory_space<vmem>>, vector<128x384xbf16>
    %cst_9 = arith.constant dense<0.000000e+00> : vector<1x384xf32>
    %12 = tpu.matmul %10, %11, %cst_9 {dimension_numbers = #tpu.dot_dimension_numbers<[1], [0], [0], [1], [0, 0, 1, 1], [], []>} : vector<1x128xbf16>, vector<128x384xbf16>, vector<1x384xf32> -> vector<1x384xf32>
    %c0_10 = arith.constant 0 : index
    %c0_11 = arith.constant 0 : index
    %13 = vector.load %arg6[%c0_10, %c0_11] : memref<1x384xf32, #tpu.memory_space<vmem>>, vector<1x384xf32>
    %14 = arith.addf %12, %13 : vector<1x384xf32>
    %c0_12 = arith.constant 0 : index
    %c0_13 = arith.constant 0 : index
    %15 = vector.load %arg15[%c0_12, %c0_13] : memref<1x384xf32, #tpu.memory_space<vmem>>, vector<1x384xf32>
    tpu.vector_store %arg15[%c0_12, %c0_13], %14 {strides = array<i32>} : memref<1x384xf32, #tpu.memory_space<vmem>>, vector<1x384xf32>,
    %c0_14 = arith.constant 0 : index
    %c0_15 = arith.constant 0 : index
    %16 = vector.load %arg7[%c0_14, %c0_15] : memref<128x384xbf16, #tpu.memory_space<vmem>>, vector<128x384xbf16>
    %c0_16 = arith.constant 0 : index
    %c0_17 = arith.constant 0 : index
    %17 = vector.load %arg8[%c0_16, %c0_17] : memref<1x384xf32, #tpu.memory_space<vmem>>, vector<1x384xf32>
    %c0_18 = arith.constant 0 : index
    %c0_19 = arith.constant 0 : index
    %18 = vector.load %arg9[%c0_18, %c0_19] : memref<128x384xbf16, #tpu.memory_space<vmem>>, vector<128x384xbf16>
    %c0_20 = arith.constant 0 : index
    %c0_21 = arith.constant 0 : index
    %19 = vector.load %arg10[%c0_20, %c0_21] : memref<1x384xf32, #tpu.memory_space<vmem>>, vector<1x384xf32>
    %c0_22 = arith.constant 0 : index
    %c0_23 = arith.constant 0 : index
    %20 = vector.load %arg11[%c0_22, %c0_23] : memref<128x384xbf16, #tpu.memory_space<vmem>>, vector<128x384xbf16>
    %c0_24 = arith.constant 0 : index
    %c0_25 = arith.constant 0 : index
    %21 = vector.load %arg12[%c0_24, %c0_25] : memref<1x384xf32, #tpu.memory_space<vmem>>, vector<1x384xf32>
    %c0_26 = arith.constant 0 : index
    %c0_27 = arith.constant 0 : index
    %22 = vector.load %arg14[%c0_26, %c0_27] : memref<2x128xf32, #tpu.memory_space<vmem>>, vector<1x128xf32>
    %c1 = arith.constant 1 : index
    %c0_28 = arith.constant 0 : index
    %23 = vector.load %arg14[%c1, %c0_28] : memref<2x128xf32, #tpu.memory_space<vmem>>, vector<1x128xf32>
    %c0_i32_29 = arith.constant 0 : i32
    %24 = arith.truncf %22 : vector<1x128xf32> to vector<1x128xbf16>
    %cst_30 = arith.constant dense<0.000000e+00> : vector<1x384xf32>
    %25 = tpu.matmul %24, %16, %cst_30 {dimension_numbers = #tpu.dot_dimension_numbers<[1], [0], [0], [1], [0, 0, 1, 1], [], []>} : vector<1x128xbf16>, vector<128x384xbf16>, vector<1x384xf32> -> vector<1x384xf32>
    %26 = arith.addf %25, %17 : vector<1x384xf32>
    %27 = arith.index_cast %c0_i32_29 : i32 to index
    %c0_31 = arith.constant 0 : index
    %28 = vector.load %arg15[%27, %c0_31] : memref<1x384xf32, #tpu.memory_space<vmem>>, vector<1x384xf32>
    %29 = vector.extract_strided_slice %28 {offsets = [0, 0], sizes = [1, 128], strides = [1, 1]} : vector<1x384xf32> to vector<1x128xf32>
    %30 = vector.extract_strided_slice %26 {offsets = [0, 0], sizes = [1, 128], strides = [1, 1]} : vector<1x384xf32> to vector<1x128xf32>
    %31 = arith.addf %29, %30 : vector<1x128xf32>
    %32 = arith.negf %31 : vector<1x128xf32>
    %33 = math.exp %32 : vector<1x128xf32>
    %cst_32 = arith.constant 1.000000e+00 : f32
    %34 = vector.broadcast %cst_32 : f32 to vector<1x128xf32>
    %35 = arith.addf %34, %33 : vector<1x128xf32>
    %36 = arith.divf %34, %35 : vector<1x128xf32>
    %37 = vector.extract_strided_slice %28 {offsets = [0, 128], sizes = [1, 128], strides = [1, 1]} : vector<1x384xf32> to vector<1x128xf32>
    %38 = vector.extract_strided_slice %26 {offsets = [0, 128], sizes = [1, 128], strides = [1, 1]} : vector<1x384xf32> to vector<1x128xf32>
    %39 = arith.addf %37, %38 : vector<1x128xf32>
    %40 = arith.negf %39 : vector<1x128xf32>
    %41 = math.exp %40 : vector<1x128xf32>
    %cst_33 = arith.constant 1.000000e+00 : f32
    %42 = vector.broadcast %cst_33 : f32 to vector<1x128xf32>
    %43 = arith.addf %42, %41 : vector<1x128xf32>
    %44 = arith.divf %42, %43 : vector<1x128xf32>
    %45 = vector.extract_strided_slice %28 {offsets = [0, 256], sizes = [1, 128], strides = [1, 1]} : vector<1x384xf32> to vector<1x128xf32>
    %46 = vector.extract_strided_slice %26 {offsets = [0, 256], sizes = [1, 128], strides = [1, 1]} : vector<1x384xf32> to vector<1x128xf32>
    %47 = arith.mulf %36, %46 : vector<1x128xf32>
    %48 = arith.addf %45, %47 : vector<1x128xf32>
    %49 = math.tanh %48 : vector<1x128xf32>
    %cst_34 = arith.constant 1.000000e+00 : f32
    %50 = vector.broadcast %cst_34 : f32 to vector<1x128xf32>
    %51 = arith.subf %50, %44 : vector<1x128xf32>
    %52 = arith.mulf %51, %49 : vector<1x128xf32>
    %53 = arith.mulf %44, %22 : vector<1x128xf32>
    %54 = arith.addf %52, %53 : vector<1x128xf32>
    %55 = arith.truncf %54 : vector<1x128xf32> to vector<1x128xbf16>
    %cst_35 = arith.constant dense<0.000000e+00> : vector<1x384xf32>
    %56 = tpu.matmul %55, %18, %cst_35 {dimension_numbers = #tpu.dot_dimension_numbers<[1], [0], [0], [1], [0, 0, 1, 1], [], []>} : vector<1x128xbf16>, vector<128x384xbf16>, vector<1x384xf32> -> vector<1x384xf32>
    %57 = arith.addf %56, %19 : vector<1x384xf32>
    %58 = arith.truncf %23 : vector<1x128xf32> to vector<1x128xbf16>
    %cst_36 = arith.constant dense<0.000000e+00> : vector<1x384xf32>
    %59 = tpu.matmul %58, %20, %cst_36 {dimension_numbers = #tpu.dot_dimension_numbers<[1], [0], [0], [1], [0, 0, 1, 1], [], []>} : vector<1x128xbf16>, vector<128x384xbf16>, vector<1x384xf32> -> vector<1x384xf32>
    %60 = arith.addf %59, %21 : vector<1x384xf32>
    %61 = vector.extract_strided_slice %57 {offsets = [0, 0], sizes = [1, 128], strides = [1, 1]} : vector<1x384xf32> to vector<1x128xf32>
    %62 = vector.extract_strided_slice %60 {offsets = [0, 0], sizes = [1, 128], strides = [1, 1]} : vector<1x384xf32> to vector<1x128xf32>
    %63 = arith.addf %61, %62 : vector<1x128xf32>
    %64 = arith.negf %63 : vector<1x128xf32>
    %65 = math.exp %64 : vector<1x128xf32>
    %cst_37 = arith.constant 1.000000e+00 : f32
    %66 = vector.broadcast %cst_37 : f32 to vector<1x128xf32>
    %67 = arith.addf %66, %65 : vector<1x128xf32>
    %68 = arith.divf %66, %67 : vector<1x128xf32>
    %69 = vector.extract_strided_slice %57 {offsets = [0, 128], sizes = [1, 128], strides = [1, 1]} : vector<1x384xf32> to vector<1x128xf32>
    %70 = vector.extract_strided_slice %60 {offsets = [0, 128], sizes = [1, 128], strides = [1, 1]} : vector<1x384xf32> to vector<1x128xf32>
    %71 = arith.addf %69, %70 : vector<1x128xf32>
    %72 = arith.negf %71 : vector<1x128xf32>
    %73 = math.exp %72 : vector<1x128xf32>
    %cst_38 = arith.constant 1.000000e+00 : f32
    %74 = vector.broadcast %cst_38 : f32 to vector<1x128xf32>
    %75 = arith.addf %74, %73 : vector<1x128xf32>
    %76 = arith.divf %74, %75 : vector<1x128xf32>
    %77 = vector.extract_strided_slice %57 {offsets = [0, 256], sizes = [1, 128], strides = [1, 1]} : vector<1x384xf32> to vector<1x128xf32>
    %78 = vector.extract_strided_slice %60 {offsets = [0, 256], sizes = [1, 128], strides = [1, 1]} : vector<1x384xf32> to vector<1x128xf32>
    %79 = arith.mulf %68, %78 : vector<1x128xf32>
    %80 = arith.addf %77, %79 : vector<1x128xf32>
    %81 = math.tanh %80 : vector<1x128xf32>
    %cst_39 = arith.constant 1.000000e+00 : f32
    %82 = vector.broadcast %cst_39 : f32 to vector<1x128xf32>
    %83 = arith.subf %82, %76 : vector<1x128xf32>
    %84 = arith.mulf %83, %81 : vector<1x128xf32>
    %85 = arith.mulf %76, %23 : vector<1x128xf32>
    %86 = arith.addf %84, %85 : vector<1x128xf32>
    %87 = arith.index_cast %c0_i32_29 : i32 to index
    %c0_40 = arith.constant 0 : index
    %88 = vector.load %arg13[%87, %c0_40] : memref<1x128xf32, #tpu.memory_space<vmem>>, vector<1x128xf32>
    tpu.vector_store %arg13[%87, %c0_40], %86 {strides = array<i32>} : memref<1x128xf32, #tpu.memory_space<vmem>>, vector<1x128xf32>,
    %c1_i32 = arith.constant 1 : i32
    %c0_41 = arith.constant 0 : index
    %c0_42 = arith.constant 0 : index
    %89 = vector.load %arg14[%c0_41, %c0_42] : memref<2x128xf32, #tpu.memory_space<vmem>>, vector<1x128xf32>
    tpu.vector_store %arg14[%c0_41, %c0_42], %54 {strides = array<i32>} : memref<2x128xf32, #tpu.memory_space<vmem>>, vector<1x128xf32>,
    %c1_43 = arith.constant 1 : index
    %c0_44 = arith.constant 0 : index
    %90 = vector.load %arg14[%c1_43, %c0_44] : memref<2x128xf32, #tpu.memory_space<vmem>>, vector<1x128xf32>
    tpu.vector_store %arg14[%c1_43, %c0_44], %86 {strides = array<i32>} : memref<2x128xf32, #tpu.memory_space<vmem>>, vector<1x128xf32>,
    return
  }
  func.func @transform_0(%arg0: i32) -> (i32, i32) {
    %c0_i32 = arith.constant 0 : i32
    %c0_i32_0 = arith.constant 0 : i32
    return %arg0, %c0_i32 : i32, i32
  }
  func.func @transform_1(%arg0: i32) -> (i32, i32) {
    %c0_i32 = arith.constant 0 : i32
    %c0_i32_0 = arith.constant 0 : i32
    %c0_i32_1 = arith.constant 0 : i32
    return %c0_i32, %c0_i32_0 : i32, i32
  }
  func.func @transform_2(%arg0: i32) -> (i32, i32) {
    %c0_i32 = arith.constant 0 : i32
    %c0_i32_0 = arith.constant 0 : i32
    %c0_i32_1 = arith.constant 0 : i32
    return %c0_i32, %c0_i32_0 : i32, i32
  }
  func.func @transform_3(%arg0: i32) -> (i32, i32) {
    %c0_i32 = arith.constant 0 : i32
    %c0_i32_0 = arith.constant 0 : i32
    %c0_i32_1 = arith.constant 0 : i32
    return %c0_i32, %c0_i32_0 : i32, i32
  }
  func.func @transform_4(%arg0: i32) -> (i32, i32) {
    %c0_i32 = arith.constant 0 : i32
    %c0_i32_0 = arith.constant 0 : i32
    %c0_i32_1 = arith.constant 0 : i32
    return %c0_i32, %c0_i32_0 : i32, i32
  }
  func.func @transform_5(%arg0: i32) -> (i32, i32) {
    %c0_i32 = arith.constant 0 : i32
    %c0_i32_0 = arith.constant 0 : i32
    %c0_i32_1 = arith.constant 0 : i32
    return %c0_i32, %c0_i32_0 : i32, i32
  }
  func.func @transform_6(%arg0: i32) -> (i32, i32) {
    %c0_i32 = arith.constant 0 : i32
    %c0_i32_0 = arith.constant 0 : i32
    %c0_i32_1 = arith.constant 0 : i32
    return %c0_i32, %c0_i32_0 : i32, i32
  }
  func.func @transform_7(%arg0: i32) -> (i32, i32) {
    %c0_i32 = arith.constant 0 : i32
    %c0_i32_0 = arith.constant 0 : i32
    %c0_i32_1 = arith.constant 0 : i32
    return %c0_i32, %c0_i32_0 : i32, i32
  }
  func.func @transform_8(%arg0: i32) -> (i32, i32) {
    %c0_i32 = arith.constant 0 : i32
    %c0_i32_0 = arith.constant 0 : i32
    %c0_i32_1 = arith.constant 0 : i32
    return %c0_i32, %c0_i32_0 : i32, i32
  }
  func.func @transform_9(%arg0: i32) -> (i32, i32) {
    %c0_i32 = arith.constant 0 : i32
    %c0_i32_0 = arith.constant 0 : i32
    %c0_i32_1 = arith.constant 0 : i32
    return %c0_i32, %c0_i32_0 : i32, i32
  }
  func.func @transform_10(%arg0: i32) -> (i32, i32) {
    %c0_i32 = arith.constant 0 : i32
    %c0_i32_0 = arith.constant 0 : i32
    %c0_i32_1 = arith.constant 0 : i32
    return %c0_i32, %c0_i32_0 : i32, i32
  }
  func.func @transform_11(%arg0: i32) -> (i32, i32) {
    %c0_i32 = arith.constant 0 : i32
    %c0_i32_0 = arith.constant 0 : i32
    %c0_i32_1 = arith.constant 0 : i32
    return %c0_i32, %c0_i32_0 : i32, i32
  }
  func.func @transform_12(%arg0: i32) -> (i32, i32) {
    %c0_i32 = arith.constant 0 : i32
    %c0_i32_0 = arith.constant 0 : i32
    return %arg0, %c0_i32 : i32, i32
  }
  func.func @transform_13(%arg0: i32) -> (i32, i32) {
    %c0_i32 = arith.constant 0 : i32
    %c0_i32_0 = arith.constant 0 : i32
    %c0_i32_1 = arith.constant 0 : i32
    return %c0_i32, %c0_i32_0 : i32, i32
  }
}

</mosaic_0001>

<bundles_post_ra>
// kernel: encoder_rnn_sequence.1
= control target key start
LH: loop header
LB: loop body
LE: loop exit
PB: predicated region body
PF: predicated region fallthrough
CT: control target
= control target key end

     0   :  { %19 = vsyncpa [#allocation4], 0  ;;  %s2183_s0 = inlined_call_operand.vmem [shape: f32[1,17], index: 0, kind: input, shape index: {}]   ;;  %s2184_s1 = inlined_call_operand.vmem [shape: f32[2,128], index: 1, kind: input, shape index: {}]   ;;  %s2185_s2 = inlined_call_operand.vmem [shape: f32[17,128], index: 2, kind: input, shape index: {}]   ;;  %s2186_s3 = inlined_call_operand.vmem [shape: f32[1,128], index: 3, kind: input, shape index: {}]   ;;  %s2187_s4 = inlined_call_operand.hbm [shape: bf16[128,384], index: 4, kind: input, shape index: {}]   ;;  %s2188_s5 = inlined_call_operand.hbm [shape: f32[1,384], index: 5, kind: input, shape index: {}]   ;;  %s2189_s6 = inlined_call_operand.hbm [shape: bf16[128,384], index: 6, kind: input, shape index: {}]   ;;  %s2190_s7 = inlined_call_operand.hbm [shape: f32[1,384], index: 7, kind: input, shape index: {}]   ;;  %s2191_s8 = inlined_call_operand.hbm [shape: bf16[128,384], index: 8, kind: input, shape index: {}]   ;;  %s2192_s9 = inlined_call_operand.hbm [shape: f32[1,384], index: 9, kind: input, shape index: {}]   ;;  %s2193_s10 = inlined_call_operand.hbm [shape: bf16[128,384], index: 10, kind: input, shape index: {}]   ;;  %s2194_s11 = inlined_call_operand.hbm [shape: f32[1,384], index: 11, kind: input, shape index: {}]   ;;  %s2195_s12 = inlined_call_operand.vmem [shape: f32[1,128], index: 12, kind: output, shape index: {0}]   ;;  %s2196_s13 = inlined_call_operand.hbm [shape: f32[2,128], index: 13, kind: output, shape index: {1}]  }
   0x1   :  { %20 = vsyncpa [#allocation7], 0 }
   0x2   :  { %21 = vsyncpa [#allocation10], 0 }
   0x3   :  { %22 = vsyncpa [#allocation13], 0 }
   0x4   :  { %23 = vsyncpa [#allocation16], 0 }
   0x5   :  { %24 = vsyncpa [#allocation5], 0  ;;  %s1966_s25 = smov [#allocation6]   ;;  %s1967_s27 = smov [#allocation9]  }
   0x6   :  { %s51_s26 = sshll.u32 %s1966_s25, 4  ;;  %s73_s28 = sshll.u32 %s1967_s27, 4  ;;  %s52_s26 = int_to_ptr.vmem [resolvable:$true] %s51_s26  ;;  %s74_s28 = int_to_ptr.vmem [resolvable:$true] %s73_s28 }
   0x7   :  { %s1782_s29 = scalar_lea.vmem %s52_s26, 48  ;;  %s1786_s30 = scalar_lea.vmem %s52_s26, 64 }
   0x8   :  { %p1783_p0 = scmp.ne.s32.totalorder %s52_s26, %s1782_s29  ;;  %p1787_p1 = scmp.lt.s32.totalorder %s52_s26, %s52_s26 }
   0x9   :  { %p1788_p2 = scmp.lt.s32.totalorder %s1786_s30, %s1782_s29 }
   0xb   :  { %p1789_p3 = por %p1788_p2, %p1787_p1 }
   0xd   :  { %p1790_p4 = pnand %p1789_p3, %p1783_p0 }
   0xf   :  { %1793 = shalt.err (!%p1790_p4)
}
  0x10   :  { %54 = dma.hbm_to_vmem [thread:$0]  %s2188_s5, 48, %s52_s26, [#allocation7]  }
  0x11   :  { %s1802_s16 = scalar_lea.vmem %s74_s28, 48  ;;  %s1806_s17 = scalar_lea.vmem %s74_s28, 64 }
  0x12   :  { %p1803_p5 = scmp.ne.s32.totalorder %s74_s28, %s1802_s16  ;;  %p1807_p6 = scmp.lt.s32.totalorder %s74_s28, %s74_s28 }
  0x13   :  { %p1808_p7 = scmp.lt.s32.totalorder %s1806_s17, %s1802_s16 }
  0x15   :  { %p1809_p8 = por %p1808_p7, %p1807_p6 }
  0x17   :  { %p1810_p9 = pnand %p1809_p8, %p1803_p5 }
  0x19   :  { %1813 = shalt.err (!%p1810_p9)
}
  0x1a   :  { %76 = dma.hbm_to_vmem [thread:$0]  %s2190_s7, 48, %s74_s28, [#allocation10]  }
  0x1b   :  { %s1968_s20 = smov [#allocation12]   ;;  %s1969_s22 = smov [#allocation3]  }
  0x1c   :  { %s95_s21 = sshll.u32 %s1968_s20, 4  ;;  %s38_s23 = sshll.u32 %s1969_s22, 4  ;;  %s96_s21 = int_to_ptr.vmem [resolvable:$true] %s95_s21  ;;  %s39_s23 = int_to_ptr.vmem [resolvable:$true] %s38_s23 }
  0x1d   :  { %s1822_s24 = scalar_lea.vmem %s96_s21, 48  ;;  %s1826_s5 = scalar_lea.vmem %s96_s21, 64 }
  0x1e   :  { %p1823_p10 = scmp.ne.s32.totalorder %s96_s21, %s1822_s24  ;;  %p1827_p11 = scmp.lt.s32.totalorder %s96_s21, %s96_s21 }
  0x1f   :  { %p1828_p12 = scmp.lt.s32.totalorder %s1826_s5, %s1822_s24 }
  0x21   :  { %p1829_p13 = por %p1828_p12, %p1827_p11 }
  0x23   :  { %p1830_p0 = pnand %p1829_p13, %p1823_p10 }
  0x25   :  { %1833 = shalt.err (!%p1830_p0)
}
  0x26   :  { %98 = dma.hbm_to_vmem [thread:$0]  %s2192_s9, 48, %s96_s21, [#allocation13]  }
  0x27   :  { %s1842_s27 = scalar_lea.vmem %s39_s23, 3072  ;;  %p1847_p2 = scmp.lt.s32.totalorder %s39_s23, %s39_s23 }
  0x28   :  { %p1843_p1 = scmp.ne.s32.totalorder %s39_s23, %s1842_s27  ;;  %p1848_p3 = scmp.lt.s32.totalorder %s1842_s27, %s1842_s27 }
  0x2a   :  { %p1849_p4 = por %p1848_p3, %p1847_p2 }
  0x2c   :  { %p1850_p5 = pnand %p1849_p4, %p1843_p1 }
  0x2e   :  { %1853 = shalt.err (!%p1850_p5)
}
  0x2f   :  { %s1970_s7 = smov 192   ;;  %s1971_s28 = smov 12  }
  0x30   :  { %44 = dma.hbm_to_vmem [thread:$0]  %s2187_s4, 3072, %s39_s23, [#allocation4], %s1970_s7, %s1970_s7, %s1971_s28  }
  0x31   :  { %s1972_s14 = smov [#allocation8]   ;;  %s1973_s16 = smov [#allocation11]  }
  0x32   :  { %s60_s15 = sshll.u32 %s1972_s14, 4  ;;  %s82_s9 = sshll.u32 %s1973_s16, 4  ;;  %s61_s15 = int_to_ptr.vmem [resolvable:$true] %s60_s15  ;;  %s83_s9 = int_to_ptr.vmem [resolvable:$true] %s82_s9 }
  0x33   :  { %s1862_s17 = scalar_lea.vmem %s61_s15, 3072  ;;  %p1867_p7 = scmp.lt.s32.totalorder %s61_s15, %s61_s15 }
  0x34   :  { %p1863_p6 = scmp.ne.s32.totalorder %s61_s15, %s1862_s17  ;;  %p1868_p8 = scmp.lt.s32.totalorder %s1862_s17, %s1862_s17 }
  0x36   :  { %p1869_p9 = por %p1868_p8, %p1867_p7 }
  0x38   :  { %p1870_p10 = pnand %p1869_p9, %p1863_p6 }
  0x3a   :  { %1873 = shalt.err (!%p1870_p10)
}
  0x3b   :  { %66 = dma.hbm_to_vmem [thread:$0]  %s2189_s6, 3072, %s61_s15, [#allocation7], %s1970_s7, %s1970_s7, %s1971_s28  }
  0x3c   :  { %s1882_s4 = scalar_lea.vmem %s83_s9, 3072  ;;  %p1887_p12 = scmp.lt.s32.totalorder %s83_s9, %s83_s9 }
  0x3d   :  { %p1883_p11 = scmp.ne.s32.totalorder %s83_s9, %s1882_s4  ;;  %p1888_p13 = scmp.lt.s32.totalorder %s1882_s4, %s1882_s4 }
  0x3f   :  { %p1889_p0 = por %p1888_p13, %p1887_p12 }
  0x41   :  { %p1890_p1 = pnand %p1889_p0, %p1883_p11 }
  0x43   :  { %1893 = shalt.err (!%p1890_p1)
}
  0x44   :  { %88 = dma.hbm_to_vmem [thread:$0]  %s2191_s8, 3072, %s83_s9, [#allocation10], %s1970_s7, %s1970_s7, %s1971_s28  }
  0x45   :  { %s1974_s22 = smov [#allocation14]   ;;  %s1975_s24 = smov [#allocation15]  }
  0x46   :  { %s104_s23 = sshll.u32 %s1974_s22, 4  ;;  %s117_s5 = sshll.u32 %s1975_s24, 4  ;;  %s105_s23 = int_to_ptr.vmem [resolvable:$true] %s104_s23  ;;  %s118_s5 = int_to_ptr.vmem [resolvable:$true] %s117_s5 }
  0x47   :  { %s1902_s6 = scalar_lea.vmem %s105_s23, 3072  ;;  %p1907_p3 = scmp.lt.s32.totalorder %s105_s23, %s105_s23 }
  0x48   :  { %p1903_p2 = scmp.ne.s32.totalorder %s105_s23, %s1902_s6  ;;  %p1908_p4 = scmp.lt.s32.totalorder %s1902_s6, %s1902_s6 }
  0x4a   :  { %p1909_p5 = por %p1908_p4, %p1907_p3 }
  0x4c   :  { %p1910_p6 = pnand %p1909_p5, %p1903_p2 }
  0x4e   :  { %1913 = shalt.err (!%p1910_p6)
}
  0x4f   :  { %110 = dma.hbm_to_vmem [thread:$0]  %s2193_s10, 3072, %s105_s23, [#allocation13], %s1970_s7, %s1970_s7, %s1971_s28  }
  0x50   :  { %s1922_s8 = scalar_lea.vmem %s118_s5, 48  ;;  %s1926_s27 = scalar_lea.vmem %s118_s5, 64 }
  0x51   :  { %p1923_p7 = scmp.ne.s32.totalorder %s118_s5, %s1922_s8  ;;  %p1927_p8 = scmp.lt.s32.totalorder %s118_s5, %s118_s5 }
  0x52   :  { %p1928_p9 = scmp.lt.s32.totalorder %s1926_s27, %s1922_s8 }
  0x54   :  { %p1929_p10 = por %p1928_p9, %p1927_p8 }
  0x56   :  { %p1930_p11 = pnand %p1929_p10, %p1923_p7 }
  0x58   :  { %1933 = shalt.err (!%p1930_p11)
}
  0x59   :  { %120 = dma.hbm_to_vmem [thread:$0]  %s2194_s11, 48, %s118_s5, [#allocation16]  }
  0x5a   :  { %1954 = dma.done.wait [#allocation4], 3072  }
  0x5b   :  { %1955 = vsyncadd [#allocation4], 4294964224 }
  0x5c   :  { %1956 = dma.done.wait [#allocation7], 3120  }
  0x5d   :  { %1957 = vsyncadd [#allocation7], 4294964176 }
  0x5e   :  { %1958 = dma.done.wait [#allocation10], 3120  }
  0x5f   :  { %1959 = vsyncadd [#allocation10], 4294964176 }
  0x60   :  { %1960 = dma.done.wait [#allocation13], 3120  }
  0x61   :  { %1961 = vsyncadd [#allocation13], 4294964176 }
  0x62   :  { %1962 = dma.done.wait [#allocation16], 48  }
  0x63   :  { %1963 = vsyncadd [#allocation16], 4294967248  ;;  %v1976_v0 = vmov 0.0   ;;  %vm1977_vm0 = vmmov 0   ;;  %vm161_vm1 = vcmask 1040384   ;;  %v154_v2 = vld [vmem:[%s2185_s2 + $0x8] sm:$0xff] }
  0x64   :  { %1522 = vmatprep.subr.mxu0 %v1976_v0  ;;  %1528 = vmatprep.mubr.msk.f32.mxu0 %vm1977_vm0, %v1976_v0  ;;  %v155_v1 = vld [vmem:[%s2185_s2 + $0x10] sm:$0x1]  ;;  %v153_v3 = vld [vmem:[%s2185_s2] sm:$0xff]  ;;  %v1628_v6 = vld [vmem:[#allocation3 + $0xa8] ss:$12 sps:$4 sm:$0xff]   ;;  %vm157_vm2 = vcmask 138240  }
  0x65   :  { %1523 = vmatpush3.msk.msra.mxu0 %vm161_vm1, %v155_v1  ;;  %v152_v4 = vld [vmem:[%s2183_s0] sm:$0x1]  ;;  %v1626_v5 = vld [vmem:[#allocation3 + $0xac] ss:$12 sps:$4 sm:$0xff]   ;;  %v1630_v8 = vld [vmem:[#allocation3 + $0x94] ss:$12 sps:$4 sm:$0xff]  }
  0x66   :  { %1524 = vmatprep.subr.mxu0 %v1976_v0  ;;  %v1629_v7 = vld [vmem:[#allocation3 + $0xb0] ss:$12 sps:$4 sm:$0xff]   ;;  %414 = vmatprep.subr.bf16.mxu1 %v1626_v5  ;;  %v1633_v11 = vld [vmem:[#allocation3 + $0x98] ss:$12 sps:$4 sm:$0xff]   ;;  %v1637_v14 = vld [vmem:[#allocation3 + $0x80] ss:$12 sps:$4 sm:$0xff]  }
  0x67   :  { %1525 = vmatpush3.msra.mxu0 %v154_v2  ;;  %415 = vmatpush1.bf16.msra.mxu1 %v1628_v6  ;;  %v1632_v9 = vld [vmem:[#allocation3 + $0x90] ss:$12 sps:$4 sm:$0xff]   ;;  %v1636_v12 = vld [vmem:[#allocation3 + $0x78] ss:$12 sps:$4 sm:$0xff]   ;;  %v1640_v15 = vld [vmem:[#allocation3 + $0x60] ss:$12 sps:$4 sm:$0xff]  }
  0x68   :  { %1526 = vmatprep.subr.mxu0 %v1976_v0  ;;  %v1634_v10 = vld [vmem:[#allocation3 + $0x7c] ss:$12 sps:$4 sm:$0xff]   ;;  %416 = vmatprep.subr.bf16.mxu1 %v1630_v8  ;;  %v1638_v13 = vld [vmem:[#allocation3 + $0x64] ss:$12 sps:$4 sm:$0xff]   ;;  %v1642_v16 = vld [vmem:[#allocation3 + $0x4c] ss:$12 sps:$4 sm:$0xff]  }
  0x69   :  { %1527 = vmatpush3.msra.mxu0 %v153_v3  ;;  %v1641_v17 = vld [vmem:[#allocation3 + $0x68] ss:$12 sps:$4 sm:$0xff]   ;;  %v1645_v20 = vld [vmem:[#allocation3 + $0x50] ss:$12 sps:$4 sm:$0xff]   ;;  %v1649_v23 = vld [vmem:[#allocation3 + $0x38] ss:$12 sps:$4 sm:$0xff]  }
  0x6a   :  { %1529 = vmatmul.mubr.msk.f32.vlgmr.msra.gmra.mxu0 %vm157_vm2, %v152_v4  ;;  %1531 = vmatprep.subr.bf16.mxu0 %v1976_v0  ;;  %v1644_v18 = vld [vmem:[#allocation3 + $0x48] ss:$12 sps:$4 sm:$0xff]   ;;  %v1648_v21 = vld [vmem:[#allocation3 + $0x30] ss:$12 sps:$4 sm:$0xff]   ;;  %v1652_v24 = vld [vmem:[#allocation3 + $0x18] ss:$12 sps:$4 sm:$0xff]  }
  0x6b   :  { %1532 = vmatpush3.bf16.msra.mxu0 %v1629_v7  ;;  %1547 = vmatprep.mubr.msk.bf16.mxu0 %vm1977_vm0, %v1976_v0  ;;  %v1646_v19 = vld [vmem:[#allocation3 + $0x34] ss:$12 sps:$4 sm:$0xff]   ;;  %v1650_v22 = vld [vmem:[#allocation3 + $0x1c] ss:$12 sps:$4 sm:$0xff]   ;;  %v1654_v26 = vld [vmem:[#allocation3 + $0x4] ss:$12 sps:$4 sm:$0xff]  }
  0x6c   :  { %1533 = vmatprep.subr.bf16.mxu0 %v1976_v0  ;;  %417 = vmatpush1.bf16.msra.mxu1 %v1632_v9  ;;  %v1653_v25 = vld [vmem:[#allocation3 + $0x20] ss:$12 sps:$4 sm:$0xff]   ;;  %v1657_v28 = vld [vmem:[#allocation3 + $0x8] ss:$12 sps:$4 sm:$0xff]   ;;  %v1660_v29 = vld [vmem:[#allocation8 + $0xac] ss:$12 sps:$4 sm:$0xff]  }
  0x6d   :  { %418 = vmatprep.subr.bf16.mxu1 %v1634_v10  ;;  %v1656_v27 = vld [vmem:[#allocation3] ss:$12 sps:$4 sm:$0xff]   ;;  %v1978_v30 = vmov 0   ;;  %v150_v31 = vld [vmem:[%s2184_s1] sm:$0x3]  ;;  %s1980_s1 = smov [#allocation17]  }
  0x6e   :  { %446 = vmatprep.mubr.bf16.mxu1 %v1978_v30  ;;  %151 = vst [vmem:[#allocation17] sm:$0x3] %v150_v31  ;;  %v156_v32 = vld [vmem:[%s2186_s3] sm:$0x1]  ;;  %v1658_v37 = vld [vmem:[#allocation8 + $0xa8] ss:$12 sps:$4 sm:$0xff]  }
  0x6f   :  { %1534 = vmatpush3.bf16.msra.mxu0 %v1633_v11  ;;  %v1682_v38 = vld [vmem:[#allocation8 + $0xb0] ss:$12 sps:$4 sm:$0xff]   ;;  %v1663_v40 = vld [vmem:[#allocation8 + $0x94] ss:$12 sps:$4 sm:$0xff]   ;;  %v1683_v42 = vld [vmem:[#allocation8 + $0x98] ss:$12 sps:$4 sm:$0xff]  }
  0x70   :  { %1535 = vmatprep.subr.bf16.mxu0 %v1976_v0  ;;  %419 = vmatpush1.bf16.msra.mxu1 %v1636_v12  ;;  %v1661_v41 = vld [vmem:[#allocation8 + $0x90] ss:$12 sps:$4 sm:$0xff]   ;;  %v1664_v44 = vld [vmem:[#allocation8 + $0x78] ss:$12 sps:$4 sm:$0xff]   ;;  %v1684_v45 = vld [vmem:[#allocation8 + $0x80] ss:$12 sps:$4 sm:$0xff]  }
  0x71   :  { %420 = vmatprep.subr.bf16.mxu1 %v1638_v13  ;;  %v1666_v43 = vld [vmem:[#allocation8 + $0x7c] ss:$12 sps:$4 sm:$0xff]   ;;  %v1669_v46 = vld [vmem:[#allocation8 + $0x64] ss:$12 sps:$4 sm:$0xff]   ;;  %v1667_v47 = vld [vmem:[#allocation8 + $0x60] ss:$12 sps:$4 sm:$0xff]  }
  0x72   :  { %v1685_v48 = vld [vmem:[#allocation8 + $0x68] ss:$12 sps:$4 sm:$0xff]   ;;  %v1672_v49 = vld [vmem:[#allocation8 + $0x4c] ss:$12 sps:$4 sm:$0xff]   ;;  %v1686_v51 = vld [vmem:[#allocation8 + $0x50] ss:$12 sps:$4 sm:$0xff]  }
  0x73   :  { %1536 = vmatpush3.bf16.msra.mxu0 %v1637_v14  ;;  %v1670_v50 = vld [vmem:[#allocation8 + $0x48] ss:$12 sps:$4 sm:$0xff]   ;;  %v1673_v53 = vld [vmem:[#allocation8 + $0x30] ss:$12 sps:$4 sm:$0xff]   ;;  %v1687_v54 = vld [vmem:[#allocation8 + $0x38] ss:$12 sps:$4 sm:$0xff]  }
  0x74   :  { %1537 = vmatprep.subr.bf16.mxu0 %v1976_v0  ;;  %421 = vmatpush1.bf16.msra.mxu1 %v1640_v15  ;;  %v1675_v52 = vld [vmem:[#allocation8 + $0x34] ss:$12 sps:$4 sm:$0xff]   ;;  %v1678_v55 = vld [vmem:[#allocation8 + $0x1c] ss:$12 sps:$4 sm:$0xff]   ;;  %v1676_v56 = vld [vmem:[#allocation8 + $0x18] ss:$12 sps:$4 sm:$0xff]  }
  0x75   :  { %422 = vmatprep.subr.bf16.mxu1 %v1642_v16  ;;  %v1688_v57 = vld [vmem:[#allocation8 + $0x20] ss:$12 sps:$4 sm:$0xff]   ;;  %v1681_v58 = vld [vmem:[#allocation8 + $0x4] ss:$12 sps:$4 sm:$0xff]   ;;  %v1689_v61 = vld [vmem:[#allocation8 + $0x8] ss:$12 sps:$4 sm:$0xff]  }
  0x76   :  { %v1679_v59 = vld [vmem:[#allocation8] ss:$12 sps:$4 sm:$0xff]   ;;  %v1692_v63 = vld [vmem:[#allocation11 + $0xac] ss:$12 sps:$4 sm:$0xff]   ;;  %v1696_v3 = vld [vmem:[#allocation11 + $0x94] ss:$12 sps:$4 sm:$0xff]  }
  0x77   :  { %1538 = vmatpush3.bf16.msra.mxu0 %v1641_v17  ;;  %v2131_v60 = vld [vmem:[#allocation17] sm:$0x1]  ;;  %v1693_v2 = vld [vmem:[#allocation11 + $0xb0] ss:$12 sps:$4 sm:$0xff]   ;;  %v1697_v5 = vld [vmem:[#allocation11 + $0x98] ss:$12 sps:$4 sm:$0xff]  }
  0x78   :  { %1539 = vmatprep.subr.bf16.mxu0 %v1976_v0  ;;  %423 = vmatpush1.bf16.msra.mxu1 %v1644_v18  ;;  %v628_v62 = vpack.c.bf16 %v2131_v60, %v2131_v60  ;;  %v1690_v1 = vld [vmem:[#allocation11 + $0xa8] ss:$12 sps:$4 sm:$0xff]   ;;  %v1694_v4 = vld [vmem:[#allocation11 + $0x90] ss:$12 sps:$4 sm:$0xff]   ;;  %v1698_v7 = vld [vmem:[#allocation11 + $0x78] ss:$12 sps:$4 sm:$0xff]  }
  0x79   :  { %424 = vmatprep.subr.bf16.mxu1 %v1646_v19  ;;  %v1700_v6 = vld [vmem:[#allocation11 + $0x7c] ss:$12 sps:$4 sm:$0xff]   ;;  %v1701_v8 = vld [vmem:[#allocation11 + $0x80] ss:$12 sps:$4 sm:$0xff]   ;;  %v1704_v9 = vld [vmem:[#allocation11 + $0x64] ss:$12 sps:$4 sm:$0xff]  }
  0x7a   :  { %v1702_v10 = vld [vmem:[#allocation11 + $0x60] ss:$12 sps:$4 sm:$0xff]   ;;  %v1705_v11 = vld [vmem:[#allocation11 + $0x68] ss:$12 sps:$4 sm:$0xff]   ;;  %v1709_v14 = vld [vmem:[#allocation11 + $0x50] ss:$12 sps:$4 sm:$0xff]  }
  0x7b   :  { %1540 = vmatpush3.bf16.msra.mxu0 %v1645_v20  ;;  %v1706_v12 = vld [vmem:[#allocation11 + $0x48] ss:$12 sps:$4 sm:$0xff]   ;;  %v1708_v13 = vld [vmem:[#allocation11 + $0x4c] ss:$12 sps:$4 sm:$0xff]   ;;  %v1710_v16 = vld [vmem:[#allocation11 + $0x30] ss:$12 sps:$4 sm:$0xff]  }
  0x7c   :  { %1541 = vmatprep.subr.bf16.mxu0 %v1976_v0  ;;  %425 = vmatpush1.bf16.msra.mxu1 %v1648_v21  ;;  %v1712_v15 = vld [vmem:[#allocation11 + $0x34] ss:$12 sps:$4 sm:$0xff]   ;;  %v1713_v17 = vld [vmem:[#allocation11 + $0x38] ss:$12 sps:$4 sm:$0xff]   ;;  %v1716_v18 = vld [vmem:[#allocation11 + $0x1c] ss:$12 sps:$4 sm:$0xff]  }
  0x7d   :  { %426 = vmatprep.subr.bf16.mxu1 %v1650_v22  ;;  %v1714_v19 = vld [vmem:[#allocation11 + $0x18] ss:$12 sps:$4 sm:$0xff]   ;;  %v1717_v20 = vld [vmem:[#allocation11 + $0x20] ss:$12 sps:$4 sm:$0xff]   ;;  %s1365_s3 = sshll.u32 %s1980_s1, 4  ;;  %s1366_s3 = int_to_ptr.vmem [resolvable:$true] %s1365_s3 }
  0x7e   :  { %v1720_v21 = vld [vmem:[#allocation11 + $0x4] ss:$12 sps:$4 sm:$0xff]   ;;  %v1718_v22 = vld [vmem:[#allocation11] ss:$12 sps:$4 sm:$0xff]   ;;  %s1934_s20 = scalar_lea.vmem %s1366_s3, 32  ;;  %p1939_p13 = scmp.lt.s32.totalorder %s1366_s3, %s1366_s3 }
  0x7f   :  { %1542 = vmatpush3.bf16.msra.mxu0 %v1649_v23  ;;  %v1721_v23 = vld [vmem:[#allocation11 + $0x8] ss:$12 sps:$4 sm:$0xff]   ;;  %p1935_p12 = scmp.ne.s32.totalorder %s1366_s3, %s1934_s20  ;;  %p1940_p0 = scmp.lt.s32.totalorder %s1934_s20, %s1934_s20 }
  0x80   :  { %1543 = vmatprep.subr.bf16.mxu0 %v1976_v0  ;;  %427 = vmatpush1.bf16.msra.mxu1 %v1652_v24  ;;  %v1724_v24 = vld [vmem:[#allocation14 + $0xac] ss:$12 sps:$4 sm:$0xff]  }
  0x81   :  { %428 = vmatprep.subr.bf16.mxu1 %v1654_v26  ;;  %p1941_p1 = por %p1940_p0, %p1939_p13 }
  0x83   :  { %1544 = vmatpush3.bf16.msra.mxu0 %v1653_v25  ;;  %v399_v25 = vlaneseq  ;;  %p1942_p2 = pnand %p1941_p1, %p1935_p12 }
  0x84   :  { %1545 = vmatprep.subr.bf16.mxu0 %v1976_v0  ;;  %429 = vmatpush1.bf16.msra.mxu1 %v1656_v27 }
  0x85   :  { %773 = vmatprep.subr.bf16.mxu1 %v1660_v29  ;;  %v400_v26 = vshrl.u32 %v399_v25, 7  ;;  %v1979_v29 = vmov 1966171168   ;;  %vm524_vm3 = vcmp.lt.s32.totalorder %v399_v25, 384 }
  0x86   :  { %v500_v31 = vunpack.c.l.s4 %v1979_v29 }
  0x87   :  { %1546 = vmatpush3.bf16.msra.mxu0 %v1657_v28  ;;  %v2148_v27 = vsub.s32 0, %v400_v26  ;;  %v2150_v28 = vsub.s32 2, %v400_v26 }
  0x88   :  { %1551 = vmatprep.subr.bf16.mxu0 %v1976_v0 }
 0x12a   :  { %v231_v33 = vpop.f32.mrf.mxu0 }
 0x12b   :  { %v232_v34 = vadd.f32 %v231_v33, %v156_v32  ;;  %v2152_v32 = vsub.s32 1, %v400_v26  ;;  %v269_v33 = vld [vmem:[#allocation6] sm:$0x7] }
 0x12c   :  { %v1530_v35 = vpop.f32.mrf.mxu0 }
 0x12d   :  { %v235_v36 = vmax.f32 %v232_v34, 0.0  ;;  %v402_v34 = vrot.slane %v269_v33, %v2148_v27  ;;  %v410_v35 = vrot.slane %v269_v33, %v2150_v28 }
 0x12f   :  { %v236_v39 = vpack.c.bf16 %v235_v36, %v235_v36  ;;  %v501_v36 = vunpack.c.0.s8 %v500_v31  ;;  %v1722_v31 = vld [vmem:[#allocation14 + $0xa8] ss:$12 sps:$4 sm:$0xff]  }
 0x131   :  { %447 = vmatmul.mubr.bf16.vlgmr.msra.gmra.mxu1 %v236_v39  ;;  %1548 = vmatmul.mubr.bf16.vlgmr.msra.gmra.mxu0 %v236_v39 }
 0x132   :  { %774 = vmatpush1.bf16.msra.mxu1 %v1658_v37  ;;  %1552 = vmatpush3.bf16.msra.mxu0 %v1682_v38  ;;  %v406_v37 = vrot.slane %v269_v33, %v2152_v32  ;;  %v1746_v33 = vld [vmem:[#allocation14 + $0xb0] ss:$12 sps:$4 sm:$0xff]  }
 0x133   :  { %775 = vmatprep.subr.bf16.mxu1 %v1663_v40  ;;  %805 = vmatprep.mubr.bf16.mxu1 %v1978_v30 }
 0x134   :  { %1553 = vmatprep.subr.bf16.mxu0 %v1976_v0  ;;  %1567 = vmatprep.mubr.msk.bf16.mxu0 %vm1977_vm0, %v1976_v0 }
 0x136   :  { %776 = vmatpush1.bf16.msra.mxu1 %v1661_v41  ;;  %1554 = vmatpush3.bf16.msra.mxu0 %v1683_v42 }
 0x137   :  { %777 = vmatprep.subr.bf16.mxu1 %v1666_v43  ;;  %1555 = vmatprep.subr.bf16.mxu0 %v1976_v0 }
 0x13a   :  { %778 = vmatpush1.bf16.msra.mxu1 %v1664_v44  ;;  %1556 = vmatpush3.bf16.msra.mxu0 %v1684_v45  ;;  %v504_v44 = vsub.s32 %v501_v36, %v400_v26  ;;  %v1725_v36 = vld [vmem:[#allocation14 + $0x90] ss:$12 sps:$4 sm:$0xff]  }
 0x13b   :  { %779 = vmatprep.subr.bf16.mxu1 %v1669_v46  ;;  %1557 = vmatprep.subr.bf16.mxu0 %v1976_v0 }
 0x13e   :  { %780 = vmatpush1.bf16.msra.mxu1 %v1667_v47  ;;  %1558 = vmatpush3.bf16.msra.mxu0 %v1685_v48 }
 0x13f   :  { %781 = vmatprep.subr.bf16.mxu1 %v1672_v49  ;;  %1559 = vmatprep.subr.bf16.mxu0 %v1976_v0 }
 0x142   :  { %782 = vmatpush1.bf16.msra.mxu1 %v1670_v50  ;;  %1560 = vmatpush3.bf16.msra.mxu0 %v1686_v51 }
 0x143   :  { %783 = vmatprep.subr.bf16.mxu1 %v1675_v52  ;;  %1561 = vmatprep.subr.bf16.mxu0 %v1976_v0 }
 0x146   :  { %784 = vmatpush1.bf16.msra.mxu1 %v1673_v53  ;;  %1562 = vmatpush3.bf16.msra.mxu0 %v1687_v54 }
 0x147   :  { %785 = vmatprep.subr.bf16.mxu1 %v1678_v55  ;;  %1563 = vmatprep.subr.bf16.mxu0 %v1976_v0  ;;  %v559_v55 = vld [vmem:[#allocation9] sm:$0x7] }
 0x14a   :  { %786 = vmatpush1.bf16.msra.mxu1 %v1676_v56  ;;  %1564 = vmatpush3.bf16.msra.mxu0 %v1688_v57  ;;  %v761_v56 = vrot.slane %v559_v55, %v2148_v27 }
 0x14b   :  { %787 = vmatprep.subr.bf16.mxu1 %v1681_v58  ;;  %1565 = vmatprep.subr.bf16.mxu0 %v1976_v0 }
 0x14e   :  { %788 = vmatpush1.bf16.msra.mxu1 %v1679_v59  ;;  %1566 = vmatpush3.bf16.msra.mxu0 %v1689_v61  ;;  %v765_v61 = vrot.slane %v559_v55, %v2152_v32 }
 0x14f   :  { %1571 = vmatprep.subr.bf16.mxu0 %v1976_v0  ;;  %1026 = vmatprep.subr.bf16.mxu1 %v1692_v63 }
 0x151   :  { %806 = vmatmul.mubr.bf16.vlgmr.msra.gmra.mxu1 %v628_v62  ;;  %1568 = vmatmul.mubr.bf16.vlgmr.msra.gmra.mxu0 %v628_v62 }
 0x152   :  { %1058 = vmatprep.mubr.bf16.mxu1 %v1978_v30  ;;  %1587 = vmatprep.mubr.msk.bf16.mxu0 %vm1977_vm0, %v1976_v0 }
 0x153   :  { %1027 = vmatpush1.bf16.msra.mxu1 %v1690_v1  ;;  %1572 = vmatpush3.bf16.msra.mxu0 %v1693_v2 }
 0x154   :  { %1573 = vmatprep.subr.bf16.mxu0 %v1976_v0  ;;  %1028 = vmatprep.subr.bf16.mxu1 %v1696_v3 }
 0x157   :  { %1029 = vmatpush1.bf16.msra.mxu1 %v1694_v4  ;;  %1574 = vmatpush3.bf16.msra.mxu0 %v1697_v5 }
 0x158   :  { %1575 = vmatprep.subr.bf16.mxu0 %v1976_v0  ;;  %1030 = vmatprep.subr.bf16.mxu1 %v1700_v6 }
 0x15b   :  { %1031 = vmatpush1.bf16.msra.mxu1 %v1698_v7  ;;  %1576 = vmatpush3.bf16.msra.mxu0 %v1701_v8 }
 0x15c   :  { %1577 = vmatprep.subr.bf16.mxu0 %v1976_v0  ;;  %1032 = vmatprep.subr.bf16.mxu1 %v1704_v9 }
 0x15f   :  { %1033 = vmatpush1.bf16.msra.mxu1 %v1702_v10  ;;  %1578 = vmatpush3.bf16.msra.mxu0 %v1705_v11 }
 0x160   :  { %1034 = vmatprep.subr.bf16.mxu1 %v1708_v13  ;;  %1579 = vmatprep.subr.bf16.mxu0 %v1976_v0 }
 0x163   :  { %1035 = vmatpush1.bf16.msra.mxu1 %v1706_v12  ;;  %1580 = vmatpush3.bf16.msra.mxu0 %v1709_v14  ;;  %v769_v14 = vrot.slane %v559_v55, %v2150_v28 }
 0x164   :  { %1036 = vmatprep.subr.bf16.mxu1 %v1712_v15  ;;  %1581 = vmatprep.subr.bf16.mxu0 %v1976_v0 }
 0x167   :  { %1037 = vmatpush1.bf16.msra.mxu1 %v1710_v16  ;;  %1582 = vmatpush3.bf16.msra.mxu0 %v1713_v17 }
 0x168   :  { %1038 = vmatprep.subr.bf16.mxu1 %v1716_v18  ;;  %1583 = vmatprep.subr.bf16.mxu0 %v1976_v0 }
 0x16b   :  { %1039 = vmatpush1.bf16.msra.mxu1 %v1714_v19  ;;  %1584 = vmatpush3.bf16.msra.mxu0 %v1717_v20 }
 0x16c   :  { %1040 = vmatprep.subr.bf16.mxu1 %v1720_v21  ;;  %1585 = vmatprep.subr.bf16.mxu0 %v1976_v0 }
 0x16f   :  { %1041 = vmatpush1.bf16.msra.mxu1 %v1718_v22  ;;  %1586 = vmatpush3.bf16.msra.mxu0 %v1721_v23 }
 0x170   :  { %1252 = vmatprep.subr.bf16.mxu1 %v1724_v24  ;;  %1591 = vmatprep.subr.bf16.mxu0 %v1976_v0 }
 0x1f1   :  { %v448_v38 = vpop.f32.mrf.mxu1  ;;  %v489_v39 = vpop.f32.mrf.mxu0 }
 0x1f2   :  { %v449_v42 = vadd.f32 %v448_v38, %v402_v34  ;;  %v490_v43 = vadd.f32 %v489_v39, %v410_v35  ;;  %v1727_v35 = vld [vmem:[#allocation14 + $0x94] ss:$12 sps:$4 sm:$0xff]   ;;  %v1730_v38 = vld [vmem:[#allocation14 + $0x7c] ss:$12 sps:$4 sm:$0xff]  }
 0x1f3   :  { %v450_v40 = vpop.f32.mrf.mxu1  ;;  %v1549_v41 = vpop.f32.mrf.mxu0  ;;  %v1748_v39 = vld [vmem:[#allocation14 + $0x80] ss:$12 sps:$4 sm:$0xff]  }
 0x1f4   :  { %v451_v45 = vadd.f32 %v450_v40, %v406_v37  ;;  %v512_v51 = vrot.slane %v490_v43, %v504_v44  ;;  %v1747_v37 = vld [vmem:[#allocation14 + $0x98] ss:$12 sps:$4 sm:$0xff]   ;;  %v1731_v41 = vld [vmem:[#allocation14 + $0x60] ss:$12 sps:$4 sm:$0xff]  }
 0x1f5   :  { %v452_v46 = vpop.f32.mrf.mxu1  ;;  %v492_v47 = vpop.f32.mrf.mxu0  ;;  %v1733_v40 = vld [vmem:[#allocation14 + $0x64] ss:$12 sps:$4 sm:$0xff]   ;;  %v1736_v43 = vld [vmem:[#allocation14 + $0x4c] ss:$12 sps:$4 sm:$0xff]  }
 0x1f6   :  { %v498_v48 = vcombine.low %v449_v42, %v451_v45  ;;  %v1749_v42 = vld [vmem:[#allocation14 + $0x68] ss:$12 sps:$4 sm:$0xff]   ;;  %v1737_v46 = vld [vmem:[#allocation14 + $0x30] ss:$12 sps:$4 sm:$0xff]   ;;  %v1751_v47 = vld [vmem:[#allocation14 + $0x38] ss:$12 sps:$4 sm:$0xff]  }
 0x1f7   :  { %v453_v49 = vpop.f32.mrf.mxu1  ;;  %v1550_v50 = vpop.f32.mrf.mxu0  ;;  %v1739_v45 = vld [vmem:[#allocation14 + $0x34] ss:$12 sps:$4 sm:$0xff]  }
 0x1f8   :  { %v505_v52 = vrot.slane %v498_v48, %v504_v44  ;;  %v1742_v48 = vld [vmem:[#allocation14 + $0x1c] ss:$12 sps:$4 sm:$0xff]   ;;  %v1740_v49 = vld [vmem:[#allocation14 + $0x18] ss:$12 sps:$4 sm:$0xff]   ;;  %v1752_v50 = vld [vmem:[#allocation14 + $0x20] ss:$12 sps:$4 sm:$0xff]  }
 0x1fa   :  { %v513_v53 = vcombine.low %v505_v52, %v512_v51  ;;  %v1745_v51 = vld [vmem:[#allocation14 + $0x4] ss:$12 sps:$4 sm:$0xff]   ;;  %v1743_v52 = vld [vmem:[#allocation14] ss:$12 sps:$4 sm:$0xff]  }
 0x1fc   :  { %v520_v54 = vrot.slane %v513_v53, %v504_v44  ;;  %v1750_v44 = vld [vmem:[#allocation14 + $0x50] ss:$12 sps:$4 sm:$0xff]   ;;  %v627_v53 = vld [vmem:[#allocation17 + $0x1] sm:$0x1] }
 0x1fd   :  { %v1107_v55 = vpack.c.bf16 %v627_v53, %v627_v53 }
 0x1fe   :  { %526 = vst.msk [vmem:[#allocation2] sm:$0x7] %vm524_vm3, %v520_v54  ;;  %v1753_v54 = vld [vmem:[#allocation14 + $0x8] ss:$12 sps:$4 sm:$0xff]  }
 0x205   :  { %v854_v62 = vld [vmem:[#allocation2] sm:$0x7] }
 0x206   :  { %v863_v9 = vrot.slane %v854_v62, 1  ;;  %v873_v20 = vrot.slane %v854_v62, 2 }
 0x211   :  { %v807_v57 = vpop.f32.mrf.mxu1  ;;  %v848_v58 = vpop.f32.mrf.mxu0 }
 0x212   :  { %v808_v59 = vadd.f32 %v807_v57, %v761_v56  ;;  %v849_v17 = vadd.f32 %v848_v58, %v769_v14 }
 0x213   :  { %v809_v63 = vpop.f32.mrf.mxu1  ;;  %v1569_v1 = vpop.f32.mrf.mxu0 }
 0x214   :  { %v855_v2 = vadd.f32 %v854_v62, %v808_v59  ;;  %v810_v6 = vadd.f32 %v809_v63, %v765_v61 }
 0x215   :  { %v811_v3 = vpop.f32.mrf.mxu1  ;;  %v851_v4 = vpop.f32.mrf.mxu0 }
 0x216   :  { %v1430_v5 = vmul.f32 -1.442695, %v855_v2  ;;  %v865_v10 = vadd.f32 %v863_v9, %v810_v6  ;;  %v592_v2 = vld [vmem:[#allocation12] sm:$0x7]  ;;  %v625_v3 = vld [vmem:[#allocation15] sm:$0x7] }
 0x217   :  { %v812_v7 = vpop.f32.mrf.mxu1  ;;  %v1570_v8 = vpop.f32.mrf.mxu0  ;;  %v1014_v4 = vrot.slane %v592_v2, %v2148_v27  ;;  %v1244_v9 = vrot.slane %v625_v3, %v2152_v32 }
 0x218   :  { %1754 = vpow2.f32 %v1430_v5  ;;  %v1431_v11 = vmul.f32 -1.442695, %v865_v10  ;;  %v1240_v5 = vrot.slane %v625_v3, %v2148_v27 }
 0x21a   :  { %1756 = vpow2.f32 %v1431_v11 }
 0x225   :  { %v1755_v12 = vpop.eup %1754 }
 0x226   :  { %v859_v13 = vadd.f32 1.0, %v1755_v12  ;;  %v1018_v12 = vrot.slane %v592_v2, %v2152_v32  ;;  %v1022_v32 = vrot.slane %v592_v2, %v2150_v28 }
 0x227   :  { %v1757_v15 = vpop.eup %1756 }
 0x228   :  { %1758 = vrcp.f32 %v859_v13  ;;  %v869_v16 = vadd.f32 1.0, %v1757_v15 }
 0x22a   :  { %1760 = vrcp.f32 %v869_v16 }
 0x235   :  { %v1759_v18 = vpop.eup %1758 }
 0x236   :  { %v872_v19 = vmul.f32 %v1759_v18, %v849_v17 }
 0x237   :  { %v1761_v22 = vpop.eup %1760 }
 0x238   :  { %v875_v21 = vadd.f32 %v873_v20, %v872_v19  ;;  %v877_v23 = vsub.f32 1.0, %v1761_v22  ;;  %v879_v26 = vmul.f32 %v1761_v22, %v2131_v60  ;;  %v1728_v60 = vld [vmem:[#allocation14 + $0x78] ss:$12 sps:$4 sm:$0xff]  }
 0x23a   :  { %1762 = vtanh.f32 %v875_v21 }
 0x247   :  { %v1763_v24 = vpop.eup %1762 }
 0x248   :  { %v878_v25 = vmul.f32 %v1763_v24, %v877_v23  ;;  %v1248_v24 = vrot.slane %v625_v3, %v2150_v28 }
 0x24a   :  { %v880_v29 = vadd.f32 %v879_v26, %v878_v25 }
 0x24c   :  { %v881_v34 = vpack.c.bf16 %v880_v29, %v880_v29  ;;  %1355 = vst [vmem:[#allocation17] sm:$0x1] %v880_v29 }
 0x24e   :  { %1059 = vmatmul.mubr.bf16.vlgmr.msra.gmra.mxu1 %v881_v34  ;;  %1588 = vmatmul.mubr.bf16.vlgmr.msra.gmra.mxu0 %v881_v34 }
 0x24f   :  { %1253 = vmatpush1.bf16.msra.mxu1 %v1722_v31  ;;  %1592 = vmatpush3.bf16.msra.mxu0 %v1746_v33 }
 0x250   :  { %1254 = vmatprep.subr.bf16.mxu1 %v1727_v35  ;;  %1284 = vmatprep.mubr.bf16.mxu1 %v1978_v30  ;;  %v1734_v30 = vld [vmem:[#allocation14 + $0x48] ss:$12 sps:$4 sm:$0xff]  }
 0x251   :  { %1593 = vmatprep.subr.bf16.mxu0 %v1976_v0  ;;  %1607 = vmatprep.mubr.msk.bf16.mxu0 %vm1977_vm0, %v1976_v0 }
 0x253   :  { %1255 = vmatpush1.bf16.msra.mxu1 %v1725_v36  ;;  %1594 = vmatpush3.bf16.msra.mxu0 %v1747_v37 }
 0x254   :  { %1256 = vmatprep.subr.bf16.mxu1 %v1730_v38  ;;  %1595 = vmatprep.subr.bf16.mxu0 %v1976_v0 }
 0x257   :  { %1257 = vmatpush1.bf16.msra.mxu1 %v1728_v60  ;;  %1596 = vmatpush3.bf16.msra.mxu0 %v1748_v39 }
 0x258   :  { %1258 = vmatprep.subr.bf16.mxu1 %v1733_v40  ;;  %1597 = vmatprep.subr.bf16.mxu0 %v1976_v0 }
 0x25b   :  { %1259 = vmatpush1.bf16.msra.mxu1 %v1731_v41  ;;  %1598 = vmatpush3.bf16.msra.mxu0 %v1749_v42 }
 0x25c   :  { %1260 = vmatprep.subr.bf16.mxu1 %v1736_v43  ;;  %1599 = vmatprep.subr.bf16.mxu0 %v1976_v0 }
 0x25f   :  { %1261 = vmatpush1.bf16.msra.mxu1 %v1734_v30  ;;  %1600 = vmatpush3.bf16.msra.mxu0 %v1750_v44 }
 0x260   :  { %1262 = vmatprep.subr.bf16.mxu1 %v1739_v45  ;;  %1601 = vmatprep.subr.bf16.mxu0 %v1976_v0 }
 0x263   :  { %1263 = vmatpush1.bf16.msra.mxu1 %v1737_v46  ;;  %1602 = vmatpush3.bf16.msra.mxu0 %v1751_v47 }
 0x264   :  { %1264 = vmatprep.subr.bf16.mxu1 %v1742_v48  ;;  %1603 = vmatprep.subr.bf16.mxu0 %v1976_v0 }
 0x267   :  { %1265 = vmatpush1.bf16.msra.mxu1 %v1740_v49  ;;  %1604 = vmatpush3.bf16.msra.mxu0 %v1752_v50 }
 0x268   :  { %1266 = vmatprep.subr.bf16.mxu1 %v1745_v51  ;;  %1605 = vmatprep.subr.bf16.mxu0 %v1976_v0 }
 0x26b   :  { %1267 = vmatpush1.bf16.msra.mxu1 %v1743_v52  ;;  %1606 = vmatpush3.bf16.msra.mxu0 %v1753_v54 }
 0x26e   :  { %1285 = vmatmul.mubr.bf16.vlgmr.msra.gmra.mxu1 %v1107_v55  ;;  %1608 = vmatmul.mubr.bf16.vlgmr.msra.gmra.mxu0 %v1107_v55 }
 0x30e   :  { %v1060_v56 = vpop.f32.mrf.mxu1  ;;  %v1101_v57 = vpop.f32.mrf.mxu0 }
 0x30f   :  { %v1061_v7 = vadd.f32 %v1060_v56, %v1014_v4  ;;  %v1102_v33 = vadd.f32 %v1101_v57, %v1022_v32 }
 0x310   :  { %v1062_v58 = vpop.f32.mrf.mxu1  ;;  %v1589_v59 = vpop.f32.mrf.mxu0 }
 0x311   :  { %v1063_v20 = vadd.f32 %v1062_v58, %v1018_v12 }
 0x312   :  { %v1064_v61 = vpop.f32.mrf.mxu1  ;;  %v1104_v62 = vpop.f32.mrf.mxu0 }
 0x314   :  { %v1065_v63 = vpop.f32.mrf.mxu1  ;;  %v1590_v1 = vpop.f32.mrf.mxu0 }
 0x32e   :  { %v1286_v0 = vpop.f32.mrf.mxu1  ;;  %v1327_v6 = vpop.f32.mrf.mxu0 }
 0x32f   :  { %v1287_v8 = vadd.f32 %v1286_v0, %v1240_v5  ;;  %v1328_v29 = vadd.f32 %v1327_v6, %v1248_v24 }
 0x330   :  { %v1288_v10 = vpop.f32.mrf.mxu1  ;;  %v1609_v11 = vpop.f32.mrf.mxu0 }
 0x331   :  { %v1333_v13 = vadd.f32 %v1287_v8, %v1061_v7  ;;  %v1289_v17 = vadd.f32 %v1288_v10, %v1244_v9 }
 0x332   :  { %v1290_v14 = vpop.f32.mrf.mxu1  ;;  %v1330_v15 = vpop.f32.mrf.mxu0 }
 0x333   :  { %v1480_v16 = vmul.f32 -1.442695, %v1333_v13  ;;  %v1340_v27 = vadd.f32 %v1289_v17, %v1063_v20 }
 0x334   :  { %v1291_v18 = vpop.f32.mrf.mxu1  ;;  %v1610_v19 = vpop.f32.mrf.mxu0 }
 0x335   :  { %1764 = vpow2.f32 %v1480_v16  ;;  %v1481_v21 = vmul.f32 -1.442695, %v1340_v27 }
 0x337   :  { %1766 = vpow2.f32 %v1481_v21 }
 0x342   :  { %v1765_v22 = vpop.eup %1764 }
 0x343   :  { %v1337_v23 = vadd.f32 1.0, %v1765_v22 }
 0x344   :  { %v1767_v25 = vpop.eup %1766 }
 0x345   :  { %1768 = vrcp.f32 %v1337_v23  ;;  %v1344_v26 = vadd.f32 1.0, %v1767_v25 }
 0x347   :  { %1770 = vrcp.f32 %v1344_v26 }
 0x352   :  { %v1769_v31 = vpop.eup %1768 }
 0x353   :  { %v1347_v34 = vmul.f32 %v1769_v31, %v1328_v29 }
 0x354   :  { %v1771_v36 = vpop.eup %1770 }
 0x355   :  { %v1348_v35 = vadd.f32 %v1347_v34, %v1102_v33  ;;  %v1350_v37 = vsub.f32 1.0, %v1771_v36  ;;  %v1352_v39 = vmul.f32 %v1771_v36, %v627_v53 }
 0x357   :  { %1772 = vtanh.f32 %v1348_v35 }
 0x364   :  { %v1773_v38 = vpop.eup %1772 }
 0x365   :  { %v1351_v60 = vmul.f32 %v1773_v38, %v1350_v37 }
 0x367   :  { %v1353_v40 = vadd.f32 %v1352_v39, %v1351_v60 }
 0x369   :  { %1354 = vst [vmem:[%s2195_s12] sm:$0x1] %v1353_v40  ;;  %1356 = vst [vmem:[#allocation17 + $0x1] sm:$0x1] %v1353_v40 }
 0x36a   :  { %1945 = shalt.err (!%p1942_p2)
}
 0x36b   :  { %1368 = dma.vmem_to_hbm [thread:$0]  %s1366_s3, 32, %s2196_s13, [#allocation5]  }
 0x36c   :  { %1964 = dma.done.wait [#allocation5], 32  }
 0x36d   :  { %1965 = vsyncadd [#allocation5], 4294967264 }
 0x36e   :  { %1374 = vsyncpa [#allocation4], 1 }
 0x36f   :  { %1375 = vsyncpa [#allocation7], 1 }
 0x370   :  { %1376 = vsyncpa [#allocation10], 1 }
 0x371   :  { %1377 = vsyncpa [#allocation13], 1 }
 0x372   :  { %1378 = vsyncpa [#allocation16], 1 }
 0x373   :  { %1379 = vsyncpa [#allocation5], 1 }

</bundles_post_ra>
